<compile_context>
chip_gen: v7x
topology: tpu7x:2x2x1
jax: 0.10.0
libtpu: 0.0.40
codegen_flags: <defaults>
</compile_context>

<pallas_src>
import math
from functools import partial

import jax
import jax.numpy as jnp
import numpy as np
from jax.experimental import pallas as pl
from jax.experimental.pallas import tpu as pltpu


# ---------------------------------------------------------------------------
# Kernels
# ---------------------------------------------------------------------------

def _morph_soft_kernel(u_ref, ew_ref, wmax_ref, o_ref, *, erosion, beta):
    """soft_max path: logsumexp over the structuring element via one MXU matmul.

    u_ref    : (CKK, TL)  im2col patches, lane-dense (batch folded into lanes)
    ew_ref   : (O, CKK)   exp(beta * (w - max_j w)), precomputed in the wrapper
    wmax_ref : (O, 1)     per-output-channel max_j w (stabilizer add-back)
    o_ref    : (O, TL)
    """
    U = u_ref[...]                                           # (CKK, TL)
    Ew = ew_ref[...]                                         # (O, CKK)
    wmax = wmax_ref[...]                                     # (O, 1)
    inv_beta = 1.0 / beta

    if erosion:
        stab = jnp.min(U, axis=0, keepdims=True)             # (1, TL) per-pixel
        Eu = jnp.exp(beta * (stab - U))                      # exponents <= 0
    else:
        stab = jnp.max(U, axis=0, keepdims=True)
        Eu = jnp.exp(beta * (U - stab))                      # exponents <= 0

    # Contraction over CKK goes to the otherwise-idle MXU; keep f32 accumulate.
    s = jnp.dot(Ew, Eu, preferred_element_type=jnp.float32)  # (O, TL)
    logs = jnp.log(s) * inv_beta

    if erosion:
        res = stab - wmax - logs                             # = -logsumexp(beta*(w-u))/beta
    else:
        res = stab + wmax + logs                             # = logsumexp(beta*(w+u))/beta
    o_ref[...] = res.astype(o_ref.dtype)                     # dense (O, TL) store


def _morph_hard_kernel(u_ref, wt_ref, o_ref, *, O, erosion):
    """Hard max/min path: per-channel cross-sublane reduce, direct row stores."""
    U = u_ref[...]                                           # (CKK, TL)
    Wt = wt_ref[...]                                         # (CKK, O)
    # O is tiny; rows are written straight into the output (no concat/relayout).
    for o in range(O):
        w_col = Wt[:, o:o + 1]                               # (CKK, 1)
        if erosion:
            row = jnp.min(U - w_col, axis=0)                 # (TL,)  == -max(w - u)
        else:
            row = jnp.max(U + w_col, axis=0)
        o_ref[o, :] = row.astype(o_ref.dtype)


# ---------------------------------------------------------------------------
# Wrapper
# ---------------------------------------------------------------------------

def _num_lane_tiles(L_total):
    """2 parallel lane tiles on v7x (2 TCs/chip); 1 fused step on v5e/v6e."""
    kind = ""
    try:
        kind = (jax.devices()[0].device_kind or "")
    except Exception:
        pass
    want = 2 if "v7" in kind.lower() else 1
    if want > 1 and (L_total % (want * 128) == 0):
        return want
    return 1


def morphology_forward(x, weight, *, kernel_size, op_type, soft_max=True, beta=15.0):
    """Pallas implementation of Morphology.forward (stride=1, dilation=1, 'same' pad)."""
    if op_type not in ("erosion2d", "dilation2d"):
        raise ValueError(op_type)
    B, C, H, W = x.shape
    O = weight.shape[0]
    K = kernel_size
    CKK = C * K * K
    HW = H * W
    L = B * HW
    pad_total = K - 1
    pad_beg = pad_total // 2
    pad_end = pad_total - pad_beg
    xp = jnp.pad(x, ((0, 0), (0, 0), (pad_beg, pad_end), (pad_beg, pad_end)))

    # im2col in nn.Unfold order (channel-major, then ki, kj), with the batch folded
    # into the lane axis -> one lane-dense (CKK, B*HW) slab.
    # NOTE: for production H*W the unfold should move in-kernel (BlockSpec the padded
    # input, build the K*K shifted views from VMEM, HW-tiled for v7x's 64 MiB VMEM)
    # to avoid the K^2 HBM read amplification; negligible at this test size.
    patches = []
    for c in range(C):
        for ki in range(K):
            for kj in range(K):
                patches.append(xp[:, c, ki:ki + H, kj:kj + W].reshape(L))
    u = jnp.stack(patches, axis=0)                           # (CKK, B*HW)

    n_tiles = _num_lane_tiles(L)
    TL = L // n_tiles
    erosion = (op_type == "erosion2d")
    w2d = weight.reshape(O, CKK)

    if soft_max:
        # Grid-invariant weight exponentials: hoisted out of the kernel. Subtracting
        # the per-channel max keeps exp(beta*w) finite for trained / large weights.
        wmax = jnp.max(w2d, axis=1, keepdims=True)           # (O, 1)
        ew = jnp.exp(float(beta) * (w2d - wmax))             # (O, CKK), all <= 1
        kernel = partial(_morph_soft_kernel, erosion=erosion, beta=float(beta))
        in_specs = [
            pl.BlockSpec((CKK, TL), lambda t: (0, t)),
            pl.BlockSpec((O, CKK), lambda t: (0, 0)),
            pl.BlockSpec((O, 1), lambda t: (0, 0)),
        ]
        operands = (u, ew, wmax)
    else:
        wt = jnp.transpose(w2d)                              # (CKK, O)
        kernel = partial(_morph_hard_kernel, O=O, erosion=erosion)
        in_specs = [
            pl.BlockSpec((CKK, TL), lambda t: (0, t)),
            pl.BlockSpec((CKK, O), lambda t: (0, 0)),
        ]
        operands = (u, wt)

    out_flat = pl.pallas_call(
        kernel,
        out_shape=jax.ShapeDtypeStruct((O, L), x.dtype),
        grid_spec=pltpu.PrefetchScalarGridSpec(
            num_scalar_prefetch=0,
            grid=(n_tiles,),
            in_specs=in_specs,
            out_specs=pl.BlockSpec((O, TL), lambda t: (0, t)),
        ),
        compiler_params=pltpu.CompilerParams(
            dimension_semantics=("parallel",)),
    )(*operands)

    # (O, B*HW) -> (B, O, H, W)
    return jnp.transpose(out_flat.reshape(O, B, H, W), (1, 0, 2, 3))


# ---------------------------------------------------------------------------
# Pure-JAX reference (mirrors the PyTorch unfold-based forward exactly)
# ---------------------------------------------------------------------------

def morphology_reference(x, weight, *, kernel_size, op_type, soft_max=True, beta=15.0):
    B, C, H, W = x.shape
    O = weight.shape[0]
    K = kernel_size
    pad_beg = (K - 1) // 2
    pad_end = (K - 1) - pad_beg
    xp = jnp.pad(x, ((0, 0), (0, 0), (pad_beg, pad_end), (pad_beg, pad_end)))
    patches = []
    for c in range(C):
        for ki in range(K):
            for kj in range(K):
                patches.append(xp[:, c, ki:ki + H, kj:kj + W].reshape(B, -1))
    u = jnp.stack(patches, axis=1)                      # (B, C*K*K, L)
    u = u[:, None]                                      # (B, 1, C*K*K, L)
    w = weight.reshape(O, -1)[None, :, :, None]         # (1, O, C*K*K, 1)
    v = (w - u) if op_type == "erosion2d" else (w + u)
    if soft_max:
        r = jax.scipy.special.logsumexp(v * beta, axis=2) / beta
    else:
        r = jnp.max(v, axis=2)
    if op_type == "erosion2d":
        r = -r
    return r.reshape(B, O, H, W)


if __name__ == "__main__":
    B, C, O, H, W, K = 2, 4, 8, 16, 16, 3
    beta = 15.0

    key = jax.random.PRNGKey(0)
    kx, kw = jax.random.split(key)
    x = jax.random.normal(kx, (B, C, H, W), dtype=jnp.float32)
    # The module initializes the weight to zeros; use a deterministic non-trivial
    # init here so the kernel is actually exercised.
    weight = 0.1 * jax.random.normal(kw, (O, C, K, K), dtype=jnp.float32)

    ok = True
    for op_type in ("dilation2d", "erosion2d"):
        for soft_max in (True, False):
            out = morphology_forward(x, weight, kernel_size=K, op_type=op_type,
                                     soft_max=soft_max, beta=beta)
            out = jax.block_until_ready(out)
            ref = morphology_reference(x, weight, kernel_size=K, op_type=op_type,
                                       soft_max=soft_max, beta=beta)
            if not np.allclose(np.asarray(out), np.asarray(ref), rtol=1e-4, atol=1e-4):
                ok = False
                print(f"MISMATCH: type={op_type} soft_max={soft_max}")

    if ok:
        print("KERNEL_OK")
</pallas_src>

<mosaic_0001>
module attributes {stable_mosaic.version = 11 : i64} {
  func.func @_morph_soft_kernel(%arg0: i32, %arg1: memref<36x512xf32, #tpu.memory_space<vmem>>, %arg2: memref<8x36xf32, #tpu.memory_space<vmem>>, %arg3: memref<8x1xf32, #tpu.memory_space<vmem>>, %arg4: memref<8x512xf32, #tpu.memory_space<vmem>>) attributes {dimension_semantics = [#tpu.dimension_semantics<parallel>], iteration_bounds = array<i64: 1>, scalar_prefetch = 0 : i64, scratch_operands = 0 : i64, tpu.core_type = #tpu.core_type<tc>, window_params = [{transform_indices = @transform_0, window_bounds = array<i64: 36, 512>}, {pipeline_mode = #tpu.pipeline_mode<synchronous>, transform_indices = @transform_1, window_bounds = array<i64: 8, 36>}, {pipeline_mode = #tpu.pipeline_mode<synchronous>, transform_indices = @transform_2, window_bounds = array<i64: 8, 1>}, {transform_indices = @transform_3, window_bounds = array<i64: 8, 512>}]} {
    %c0 = arith.constant 0 : index
    %c0_0 = arith.constant 0 : index
    %0 = vector.load %arg1[%c0, %c0_0] : memref<36x512xf32, #tpu.memory_space<vmem>>, vector<36x512xf32>
    %c0_1 = arith.constant 0 : index
    %c0_2 = arith.constant 0 : index
    %1 = vector.load %arg2[%c0_1, %c0_2] : memref<8x36xf32, #tpu.memory_space<vmem>>, vector<8x36xf32>
    %c0_3 = arith.constant 0 : index
    %c0_4 = arith.constant 0 : index
    %2 = vector.load %arg3[%c0_3, %c0_4] : memref<8x1xf32, #tpu.memory_space<vmem>>, vector<8x1xf32>
    %cst = arith.constant dense<0xFF800000> : vector<512xf32>
    %3 = vector.multi_reduction <maximumf>, %0, %cst [0] : vector<36x512xf32> to vector<512xf32>
    %4 = vector.shape_cast %3 : vector<512xf32> to vector<1x512xf32>
    %5 = vector.broadcast %4 : vector<1x512xf32> to vector<36x512xf32>
    %6 = arith.subf %0, %5 : vector<36x512xf32>
    %cst_5 = arith.constant 1.500000e+01 : f32
    %7 = vector.broadcast %cst_5 : f32 to vector<36x512xf32>
    %8 = arith.mulf %7, %6 : vector<36x512xf32>
    %9 = math.exp %8 : vector<36x512xf32>
    %cst_6 = arith.constant dense<0.000000e+00> : vector<8x512xf32>
    %10 = tpu.matmul %1, %9, %cst_6 {dimension_numbers = #tpu.dot_dimension_numbers<[1], [0], [0], [1], [0, 0, 1, 1], [], []>} : vector<8x36xf32>, vector<36x512xf32>, vector<8x512xf32> -> vector<8x512xf32>
    %11 = math.log %10 : vector<8x512xf32>
    %cst_7 = arith.constant 0.0666666701 : f32
    %12 = vector.broadcast %cst_7 : f32 to vector<8x512xf32>
    %13 = arith.mulf %11, %12 : vector<8x512xf32>
    %14 = vector.broadcast %4 : vector<1x512xf32> to vector<8x512xf32>
    %15 = vector.broadcast %2 : vector<8x1xf32> to vector<8x512xf32>
    %16 = arith.addf %14, %15 : vector<8x512xf32>
    %17 = arith.addf %16, %13 : vector<8x512xf32>
    %c0_8 = arith.constant 0 : index
    %c0_9 = arith.constant 0 : index
    %18 = vector.load %arg4[%c0_8, %c0_9] : memref<8x512xf32, #tpu.memory_space<vmem>>, vector<8x512xf32>
    tpu.vector_store %arg4[%c0_8, %c0_9], %17 {strides = array<i32>} : memref<8x512xf32, #tpu.memory_space<vmem>>, vector<8x512xf32>,
    return
  }
  func.func @transform_0(%arg0: i32) -> (i32, i32) {
    %c0_i32 = arith.constant 0 : i32
    %c0_i32_0 = arith.constant 0 : i32
    return %c0_i32, %arg0 : i32, i32
  }
  func.func @transform_1(%arg0: i32) -> (i32, i32) {
    %c0_i32 = arith.constant 0 : i32
    %c0_i32_0 = arith.constant 0 : i32
    %c0_i32_1 = arith.constant 0 : i32
    return %c0_i32, %c0_i32_0 : i32, i32
  }
  func.func @transform_2(%arg0: i32) -> (i32, i32) {
    %c0_i32 = arith.constant 0 : i32
    %c0_i32_0 = arith.constant 0 : i32
    %c0_i32_1 = arith.constant 0 : i32
    return %c0_i32, %c0_i32_0 : i32, i32
  }
  func.func @transform_3(%arg0: i32) -> (i32, i32) {
    %c0_i32 = arith.constant 0 : i32
    %c0_i32_0 = arith.constant 0 : i32
    return %c0_i32, %arg0 : i32, i32
  }
}

</mosaic_0001>

<bundles_post_ra>
// kernel: tpu_custom_call.1
= control target key start
LH: loop header
LB: loop body
LE: loop exit
PB: predicated region body
PF: predicated region fallthrough
CT: control target
= control target key end

     0   :  { %8 = vsyncpa [#allocation3], 0  ;;  %s679_s0 = inlined_call_operand.hbm [shape: f32[36,512], index: 0, kind: input, shape index: {}]   ;;  %s680_s1 = inlined_call_operand.vmem [shape: f32[8,36], index: 1, kind: input, shape index: {}]   ;;  %s681_s2 = inlined_call_operand.vmem [shape: f32[8,1], index: 2, kind: input, shape index: {}]   ;;  %s682_s3 = inlined_call_operand.hbm [shape: f32[8,512], index: 3, kind: output, shape index: {}]  }
   0x1   :  { %9 = vsyncpa [#allocation4], 0  ;;  %s503_s12 = smov [#allocation2]   ;;  %s455_s16 = scalar_lea.hbm %s679_s0, 2560 }
   0x2   :  { %s15_s13 = sshll.u32 %s503_s12, 4  ;;  %p456_p0 = scmp.ne.s32.totalorder %s679_s0, %s455_s16  ;;  %s16_s13 = int_to_ptr.vmem [resolvable:$true] %s15_s13 }
   0x3   :  { %p459_p1 = scmp.lt.u32.totalorder %s455_s16, %s679_s0 }
   0x5   :  { %p461_p2 = pnand %p459_p1, %p456_p0 }
   0x7   :  { %464 = shalt.err (!%p461_p2)
}
   0x8   :  { %s465_s21 = scalar_lea.vmem %s16_s13, 2560  ;;  %p470_p4 = scmp.lt.s32.totalorder %s16_s13, %s16_s13 }
   0x9   :  { %p466_p3 = scmp.ne.s32.totalorder %s16_s13, %s465_s21  ;;  %p471_p5 = scmp.lt.s32.totalorder %s465_s21, %s465_s21 }
   0xb   :  { %p472_p6 = por %p471_p5, %p470_p4 }
   0xd   :  { %p473_p7 = pnand %p472_p6, %p466_p3 }
   0xf   :  { %476 = shalt.err (!%p473_p7)
}
  0x10   :  { %s504_s22 = smov 512   ;;  %s505_s23 = smov 32  }
  0x11   :  { %21 = dma.hbm_to_vmem [thread:$0]  %s679_s0, 2560, %s16_s13, [#allocation3], %s504_s22, %s504_s22, %s505_s23  }
  0x12   :  { %499 = dma.done.wait [#allocation3], 2560  }
  0x13   :  { %500 = vsyncadd [#allocation3], 4294964736  ;;  %v506_v0 = vmov 0.0   ;;  %v507_v1 = vmov 0   ;;  %v541_v2 = vld [vmem:[#allocation2 + $0x8] sm:$0xff]  ;;  %vm54_vm0 = vcmask 1043456  }
  0x14   :  { %256 = vmatprep.mubr.f32.mxu0 %v506_v0  ;;  %327 = vmatprep.mubr.f32.mxu1 %v506_v0  ;;  %v543_v3 = vld [vmem:[#allocation2 + $0x28] sm:$0xff]  ;;  %v553_v8 = vld [vmem:[#allocation2 + $0x18] sm:$0xff]  ;;  %v566_v15 = vld [vmem:[#allocation2] sm:$0xff]  ;;  %vm176_vm1 = vcmask 293888  }
  0x15   :  { %406 = vset.pattern.permute.xlu0 %v507_v1  ;;  %v545_v4 = vld [vmem:[#allocation2 + $0x48] sm:$0xff]  ;;  %v63_v7 = vmax.f32 %v541_v2, %v543_v3  ;;  %v555_v9 = vld [vmem:[#allocation2 + $0x38] sm:$0xff]  ;;  %v568_v16 = vld [vmem:[#allocation2 + $0x20] sm:$0xff] }
  0x16   :  { %v547_v5 = vld [vmem:[#allocation2 + $0x68] sm:$0xff]  ;;  %v557_v10 = vld [vmem:[#allocation2 + $0x58] sm:$0xff]  ;;  %v85_v14 = vmax.f32 %v553_v8, %v555_v9  ;;  %v572_v18 = vld [vmem:[#allocation2 + $0x40] sm:$0xff]  ;;  %v51_v21 = vmax.f32 %v566_v15, %v568_v16 }
  0x17   :  { %v549_v6 = vld [vmem:[#allocation2 + $0x88] sm:$0xf]  ;;  %v559_v11 = vld [vmem:[#allocation2 + $0x78] sm:$0xff]  ;;  %v64_v12 = vmax.f32 %v63_v7, %v545_v4  ;;  %v574_v19 = vld [vmem:[#allocation2 + $0x60] sm:$0xff] }
  0x18   :  { %v562_v13 = vld [vmem:[#allocation2 + $0x98] sm:$0xf]  ;;  %v66_v17 = vsel %vm54_vm0, %v549_v6, -inf  ;;  %v576_v20 = vld [vmem:[#allocation2 + $0x80] sm:$0xf]  ;;  %v86_v23 = vmax.f32 %v85_v14, %v557_v10  ;;  %v582_v24 = vld [vmem:[#allocation2 + $0x10] sm:$0xff]  ;;  %v52_v28 = vmax.f32 %v51_v21, %v572_v18 }
  0x19   :  { %v65_v22 = vmax.f32 %v64_v12, %v547_v5  ;;  %v584_v25 = vld [vmem:[#allocation2 + $0x30] sm:$0xff]  ;;  %v88_v27 = vsel %vm54_vm0, %v562_v13, -inf  ;;  %v55_v33 = vsel %vm54_vm0, %v576_v20, -inf  ;;  %v50_v35 = vld [vmem:[%s681_s2] sm:$0xff] }
  0x1a   :  { %v586_v26 = vld [vmem:[#allocation2 + $0x50] sm:$0xff]  ;;  %v74_v30 = vmax.f32 %v582_v24, %v584_v25  ;;  %v87_v32 = vmax.f32 %v86_v23, %v559_v11  ;;  %v53_v36 = vmax.f32 %v52_v28, %v574_v19  ;;  %348 = vperm.xlu0 %406, %v50_v35  }
  0x1b   :  { %v591_v29 = vld [vmem:[#allocation2 + $0x90] sm:$0xf]  ;;  %v67_v31 = vmax.f32 %v65_v22, %v66_v17 }
  0x1c   :  { %v598_v34 = vld [vmem:[#allocation2 + $0x70] sm:$0xff]  ;;  %v75_v37 = vmax.f32 %v74_v30, %v586_v26  ;;  %v89_v39 = vmax.f32 %v87_v32, %v88_v27  ;;  %v77_v40 = vsel %vm54_vm0, %v591_v29, -inf  ;;  %v56_v41 = vmax.f32 %v53_v36, %v55_v33 }
  0x1d   :  { %v68_v38 = vrot.slane %v67_v31, 4 }
  0x1e   :  { %v76_v42 = vmax.f32 %v75_v37, %v598_v34  ;;  %v90_v44 = vrot.slane %v89_v39, 4  ;;  %v57_v45 = vrot.slane %v56_v41, 4 }
  0x1f   :  { %v69_v43 = vmax.f32 %v67_v31, %v68_v38 }
  0x20   :  { %v78_v46 = vmax.f32 %v76_v42, %v77_v40  ;;  %v91_v48 = vmax.f32 %v89_v39, %v90_v44  ;;  %v58_v49 = vmax.f32 %v56_v41, %v57_v45 }
  0x21   :  { %v70_v47 = vrot.slane %v69_v43, 2 }
  0x22   :  { %v79_v50 = vrot.slane %v78_v46, 4  ;;  %v92_v52 = vrot.slane %v91_v48, 2  ;;  %v59_v53 = vrot.slane %v58_v49, 2 }
  0x23   :  { %v71_v51 = vmax.f32 %v69_v43, %v70_v47 }
  0x24   :  { %v80_v54 = vmax.f32 %v78_v46, %v79_v50  ;;  %v93_v56 = vmax.f32 %v91_v48, %v92_v52  ;;  %v60_v57 = vmax.f32 %v58_v49, %v59_v53 }
  0x25   :  { %v72_v55 = vrot.slane %v71_v51, 1 }
  0x26   :  { %v81_v58 = vrot.slane %v80_v54, 2  ;;  %v94_v60 = vrot.slane %v93_v56, 1  ;;  %v61_v61 = vrot.slane %v60_v57, 1 }
  0x27   :  { %v608_v59 = vmax.f32 %v71_v51, %v72_v55 }
  0x28   :  { %v82_v62 = vmax.f32 %v80_v54, %v81_v58  ;;  %v616_v7 = vmax.f32 %v93_v56, %v94_v60  ;;  %v618_v12 = vmax.f32 %v60_v57, %v61_v61 }
  0x29   :  { %v97_v63 = vsub.f32 %v541_v2, %v608_v59  ;;  %v101_v0 = vsub.f32 %v543_v3, %v608_v59  ;;  %v113_v1 = vsub.f32 %v549_v6, %v608_v59  ;;  %v105_v33 = vsub.f32 %v545_v4, %v608_v59 }
  0x2a   :  { %v99_v21 = vsub.f32 %v553_v8, %v616_v7  ;;  %v83_v22 = vrot.slane %v82_v62, 1  ;;  %v103_v2 = vsub.f32 %v555_v9, %v616_v7  ;;  %v96_v3 = vsub.f32 %v566_v15, %v618_v12 }
  0x2b   :  { %v117_v14 = vmul.f32 15.0, %v97_v63  ;;  %v121_v17 = vmul.f32 15.0, %v101_v0  ;;  %v133_v23 = vmul.f32 15.0, %v113_v1  ;;  %v100_v6 = vsub.f32 %v568_v16, %v618_v12 }
  0x2c   :  { %v119_v30 = vmul.f32 15.0, %v99_v21  ;;  %v123_v31 = vmul.f32 15.0, %v103_v2  ;;  %v116_v32 = vmul.f32 15.0, %v96_v3  ;;  %v630_v35 = vmax.f32 %v82_v62, %v83_v22 }
  0x2d   :  { %v138_v27 = vmul.f32 1.442695, %v117_v14  ;;  %v146_v28 = vmul.f32 1.442695, %v121_v17  ;;  %v120_v8 = vmul.f32 15.0, %v100_v6  ;;  %v109_v9 = vsub.f32 %v547_v5, %v608_v59 }
  0x2e   :  { %v170_v15 = vmul.f32 1.442695, %v133_v23  ;;  %v142_v36 = vmul.f32 1.442695, %v119_v30  ;;  %v150_v37 = vmul.f32 1.442695, %v123_v31  ;;  %v98_v39 = vsub.f32 %v582_v24, %v630_v35 }
  0x2f   :  { %407 = vpow2.f32 %v138_v27  ;;  %v136_v16 = vmul.f32 1.442695, %v116_v32  ;;  %v144_v38 = vmul.f32 1.442695, %v120_v8  ;;  %v102_v4 = vsub.f32 %v584_v25, %v630_v35 }
  0x30   :  { %409 = vpow2.f32 %v146_v28  ;;  %v125_v40 = vmul.f32 15.0, %v105_v33  ;;  %v129_v41 = vmul.f32 15.0, %v109_v9  ;;  %v107_v42 = vsub.f32 %v557_v10, %v616_v7 }
  0x31   :  { %411 = vpow2.f32 %v142_v36  ;;  %v118_v5 = vmul.f32 15.0, %v98_v39  ;;  %v122_v43 = vmul.f32 15.0, %v102_v4  ;;  %v115_v44 = vsub.f32 %v562_v13, %v616_v7 }
  0x32   :  { %413 = vpow2.f32 %v150_v37  ;;  %v112_v45 = vsub.f32 %v576_v20, %v618_v12  ;;  %v111_v24 = vsub.f32 %v559_v11, %v616_v7  ;;  %v154_v47 = vmul.f32 1.442695, %v125_v40 }
  0x33   :  { %415 = vpow2.f32 %v170_v15  ;;  %v140_v25 = vmul.f32 1.442695, %v118_v5  ;;  %v148_v46 = vmul.f32 1.442695, %v122_v43  ;;  %v162_v48 = vmul.f32 1.442695, %v129_v41 }
  0x34   :  { %417 = vpow2.f32 %v136_v16  ;;  %v127_v49 = vmul.f32 15.0, %v107_v42  ;;  %v131_v10 = vmul.f32 15.0, %v111_v24  ;;  %v104_v50 = vsub.f32 %v572_v18, %v618_v12  ;;  %v49_v42 = vld [vmem:[%s680_s1] sm:$0xff]  ;;  %s508_s1 = smov [#allocation5]  }
  0x35   :  { %419 = vpow2.f32 %v144_v38  ;;  %v108_v13 = vsub.f32 %v574_v19, %v618_v12  ;;  %v106_v20 = vsub.f32 %v586_v26, %v630_v35  ;;  %v110_v11 = vsub.f32 %v598_v34, %v630_v35  ;;  %s369_s28 = sshll.u32 %s508_s1, 4  ;;  %s370_s28 = int_to_ptr.vmem [resolvable:$true] %s369_s28 }
  0x36   :  { %421 = vpow2.f32 %v140_v25  ;;  %v114_v52 = vsub.f32 %v591_v29, %v630_v35  ;;  %v158_v53 = vmul.f32 1.442695, %v127_v49  ;;  %v124_v54 = vmul.f32 15.0, %v104_v50  ;;  %s477_s29 = scalar_lea.vmem %s370_s28, 512  ;;  %p482_p9 = scmp.lt.s32.totalorder %s370_s28, %s370_s28 }
  0x37   :  { %423 = vpow2.f32 %v148_v46  ;;  %v166_v56 = vmul.f32 1.442695, %v131_v10  ;;  %v128_v18 = vmul.f32 15.0, %v108_v13  ;;  %v126_v57 = vmul.f32 15.0, %v106_v20  ;;  %p478_p8 = scmp.ne.s32.totalorder %s370_s28, %s477_s29  ;;  %p483_p10 = scmp.lt.s32.totalorder %s477_s29, %s477_s29 }
  0x38   :  { %v130_v58 = vmul.f32 15.0, %v110_v11  ;;  %v135_v19 = vmul.f32 15.0, %v115_v44  ;;  %425 = vpow2.f32 %v154_v47  ;;  %v152_v61 = vmul.f32 1.442695, %v124_v54 }
  0x39   :  { %v408_v51 = vpop.eup %407  ;;  %v132_v62 = vmul.f32 15.0, %v112_v45  ;;  %427 = vpow2.f32 %v162_v48  ;;  %v160_v34 = vmul.f32 1.442695, %v128_v18  ;;  %v156_v29 = vmul.f32 1.442695, %v126_v57  ;;  %p484_p11 = por %p483_p10, %p482_p9 }
  0x3a   :  { %v410_v55 = vpop.eup %409  ;;  %429 = vpow2.f32 %v158_v53  ;;  %v134_v14 = vmul.f32 15.0, %v114_v52  ;;  %v164_v17 = vmul.f32 1.442695, %v130_v58  ;;  %v174_v22 = vmul.f32 1.442695, %v135_v19 }
  0x3b   :  { %v384_v60 = vpack.c.bf16 %v410_v55, %v408_v51  ;;  %v412_v26 = vpop.eup %411  ;;  %431 = vpow2.f32 %v166_v56  ;;  %v168_v2 = vmul.f32 1.442695, %v132_v62  ;;  %p485_p12 = pnand %p484_p11, %p478_p8 }
  0x3c   :  { %v414_v63 = vpop.eup %413  ;;  %433 = vpow2.f32 %v152_v61  ;;  %v172_v27 = vmul.f32 1.442695, %v134_v14 }
  0x3d   :  { %385 = vmatprep.subr.bf16.mxu0 %v384_v60  ;;  %v416_v0 = vpop.eup %415  ;;  %v392_v1 = vpack.c.bf16 %v414_v63, %v412_v26  ;;  %435 = vpow2.f32 %v160_v34 }
  0x3e   :  { %v418_v21 = vpop.eup %417  ;;  %437 = vpow2.f32 %v156_v29 }
  0x3f   :  { %v420_v23 = vpop.eup %419  ;;  %393 = vmatprep.subr.bf16.mxu1 %v392_v1  ;;  %439 = vpow2.f32 %v164_v17 }
  0x40   :  { %v386_v3 = vpack.c.bf16 %v420_v23, %v418_v21  ;;  %v422_v6 = vpop.eup %421  ;;  %441 = vpow2.f32 %v174_v22 }
  0x41   :  { %v424_v28 = vpop.eup %423  ;;  %443 = vpow2.f32 %v168_v2 }
  0x42   :  { %387 = vmatpush1.bf16.msra.mxu0 %v386_v3  ;;  %v394_v30 = vpack.c.bf16 %v424_v28, %v422_v6  ;;  %v426_v31 = vpop.eup %425  ;;  %445 = vpow2.f32 %v172_v27 }
  0x43   :  { %v428_v32 = vpop.eup %427 }
  0x44   :  { %395 = vmatpush1.bf16.msra.mxu1 %v394_v30  ;;  %v430_v33 = vpop.eup %429  ;;  %v388_v8 = vpack.c.bf16 %v428_v32, %v426_v31 }
  0x45   :  { %v432_v9 = vpop.eup %431 }
  0x46   :  { %v434_v15 = vpop.eup %433  ;;  %389 = vmatprep.subr.bf16.mxu0 %v388_v8  ;;  %v396_v36 = vpack.c.bf16 %v432_v9, %v430_v33 }
  0x47   :  { %v436_v37 = vpop.eup %435 }
  0x48   :  { %v438_v16 = vpop.eup %437  ;;  %397 = vmatprep.subr.bf16.mxu1 %v396_v36  ;;  %v390_v38 = vpack.c.bf16 %v436_v37, %v434_v15 }
  0x49   :  { %v440_v39 = vpop.eup %439 }
  0x4a   :  { %v442_v4 = vpop.eup %441  ;;  %391 = vmatpush1.bf16.msra.mxu0 %v390_v38  ;;  %v398_v40 = vpack.c.bf16 %v440_v39, %v438_v16 }
  0x4b   :  { %v444_v41 = vpop.eup %443  ;;  %378 = vmatprep.subr.msk.mxu0 %vm54_vm0, %v416_v0 }
  0x4c   :  { %399 = vmatpush1.bf16.msra.mxu1 %v398_v40  ;;  %v446_v5 = vpop.eup %445 }
  0x4d   :  { %381 = vmatprep.subr.msk.mxu1 %vm54_vm0, %v442_v4 }
  0x4e   :  { %379 = vmatpush1.msk.msra.mxu0 %vm54_vm0, %v444_v41 }
  0x4f   :  { %380 = vmatmul.mubr.msk.f32.vlgmr.msra.gmra.mrb[0].mxu0 %vm176_vm1, %v49_v42 }
  0x50   :  { %382 = vmatpush1.msk.msra.mxu1 %vm54_vm0, %v446_v5 }
  0x51   :  { %383 = vmatmul.mubr.msk.f32.vlgmr.msra.gmra.mrb[0].mxu1 %vm176_vm1, %v49_v42 }
  0x99   :  { %v349_v25 = vpop.permute.xlu0 %348 }
  0x9a   :  { %v351_v49 = vadd.f32 %v349_v25, %v618_v12  ;;  %v352_v13 = vadd.f32 %v349_v25, %v608_v59  ;;  %v353_v52 = vadd.f32 %v349_v25, %v630_v35  ;;  %v354_v55 = vadd.f32 %v349_v25, %v616_v7 }
 0x122   :  { %v258_v43 = vpop.f32.mrb[0].mxu0 }
 0x123   :  { %447 = vlog2.f32 %v258_v43  ;;  %v260_v44 = vpop.f32.mrb[1].mxu0 }
 0x124   :  { %v329_v45 = vpop.f32.mrb[0].mxu1  ;;  %449 = vlog2.f32 %v260_v44 }
 0x125   :  { %451 = vlog2.f32 %v329_v45  ;;  %v331_v24 = vpop.f32.mrb[1].mxu1 }
 0x126   :  { %453 = vlog2.f32 %v331_v24 }
 0x12d   :  { %v448_v46 = vpop.eup %447 }
 0x12e   :  { %v450_v47 = vpop.eup %449  ;;  %v335_v48 = vmul.f32 0.6931472, %v448_v46 }
 0x12f   :  { %v452_v10 = vpop.eup %451  ;;  %v337_v50 = vmul.f32 0.6931472, %v450_v47 }
 0x130   :  { %v454_v20 = vpop.eup %453  ;;  %v342_v11 = vmul.f32 0.06666667, %v335_v48  ;;  %v339_v51 = vmul.f32 0.6931472, %v452_v10 }
 0x131   :  { %v343_v53 = vmul.f32 0.06666667, %v337_v50  ;;  %v341_v54 = vmul.f32 0.6931472, %v454_v20 }
 0x132   :  { %v344_v56 = vmul.f32 0.06666667, %v339_v51  ;;  %v355_v18 = vadd.f32 %v351_v49, %v342_v11 }
 0x133   :  { %v345_v57 = vmul.f32 0.06666667, %v341_v54  ;;  %v356_v58 = vadd.f32 %v352_v13, %v343_v53 }
 0x134   :  { %v357_v12 = vadd.f32 %v353_v52, %v344_v56  ;;  %359 = vst [vmem:[#allocation5] sm:$0xff] %v355_v18 }
 0x135   :  { %v358_v60 = vadd.f32 %v354_v55, %v345_v57  ;;  %360 = vst [vmem:[#allocation5 + $0x8] sm:$0xff] %v356_v58 }
 0x136   :  { %361 = vst [vmem:[#allocation5 + $0x10] sm:$0xff] %v357_v12 }
 0x137   :  { %362 = vst [vmem:[#allocation5 + $0x18] sm:$0xff] %v358_v60 }
 0x138   :  { %488 = shalt.err (!%p485_p12)
}
 0x139   :  { %s489_s5 = scalar_lea.hbm %s682_s3, 512 }
 0x13a   :  { %p490_p13 = scmp.ne.s32.totalorder %s682_s3, %s489_s5  ;;  %p493_p0 = scmp.lt.u32.totalorder %s489_s5, %s682_s3 }
 0x13c   :  { %p495_p1 = pnand %p493_p0, %p490_p13 }
 0x13e   :  { %498 = shalt.err (!%p495_p1)
}
 0x13f   :  { %372 = dma.vmem_to_hbm [thread:$0]  %s370_s28, 512, %s682_s3, [#allocation4]  }
 0x140   :  { %501 = dma.done.wait [#allocation4], 512  }
 0x141   :  { %502 = vsyncadd [#allocation4], 4294966784 }
 0x142   :  { %376 = vsyncpa [#allocation3], 1 }
 0x143   :  { %377 = vsyncpa [#allocation4], 1 }

</bundles_post_ra>
